<compile_context>
chip_gen: v5e
topology: v5e:2x2
jax: 0.10.0
libtpu: 0.0.40
codegen_flags: <defaults>
</compile_context>

<pallas_src>
import jax
import jax.numpy as jnp
from jax import lax
from jax.experimental import pallas as pl
from jax.experimental.pallas import tpu as pltpu

MXU_DTYPE = jnp.bfloat16   # MXU operand dtype; accumulation/epilogue are f32.


def _silu(y):
    return y * jax.nn.sigmoid(y)


# ----------------------------------------------------------------------------
# Fused whole-layer Pallas kernel (built per static layer configuration)
# ----------------------------------------------------------------------------
def _make_layer_kernel(cfgs, n_in):
    def kernel(*refs):
        in_refs = refs[:n_in]
        o_ref = refs[n_in]

        # Activations live as values in (channels, H*W) layout: channels on
        # sublanes, spatial positions on lanes (lane-dense at these sizes).
        x = in_refs[0][...]                                   # (Cin0, H0*W0) f32

        for cfg in cfgs:
            H, W = cfg["H"], cfg["W"]
            Cin, Cm, C3, s = cfg["cin"], cfg["cm"], cfg["c3"], cfg["s"]
            HW = H * W

            wpack = in_refs[cfg["w_idx"]][...]                # bf16 (2*Cm+C3, .)
            bpack = in_refs[cfg["b_idx"]][...]                # f32  (2*Cm+C3, 1)
            w1 = wpack[0:Cm, 0:Cin]                           # (Cm, Cin)
            w2 = wpack[Cm:2 * Cm, 0:9 * Cm]                   # (Cm, 9*Cm)
            k3 = Cm + Cin if cfg["has_sc"] else Cm
            w3 = wpack[2 * Cm:2 * Cm + C3, 0:k3]              # (C3, k3)
            b1 = bpack[0:Cm, :]
            b2 = bpack[Cm:2 * Cm, :]
            b3 = bpack[2 * Cm:2 * Cm + C3, :]

            xb = x.astype(MXU_DTYPE)

            # ---- cv1: 1x1 conv (BN folded into w1) + SiLU -------------------
            y1 = _silu(jnp.dot(w1, xb, preferred_element_type=jnp.float32) + b1)

            # ---- cv2: 3x3 conv (pad 1) as one im2col matmul (K = 9*Cm) ------
            # Zero-pad the flattened spatial axis once; every tap is a static
            # lane slice; row-wraparound taps are zeroed with 0/1 masks.
            zpad = jnp.zeros((Cm, W + 1), jnp.float32)
            ypad = jnp.concatenate([zpad, y1, zpad], axis=1)  # (Cm, HW+2W+2)
            col = lax.broadcasted_iota(jnp.int32, (1, HW), 1) % W
            mask_l = (col != 0).astype(jnp.float32)           # valid when w-1 >= 0
            mask_r = (col != W - 1).astype(jnp.float32)       # valid when w+1 < W
            taps = []
            for kh in range(3):
                for kw in range(3):
                    off = (W + 1) + (kh - 1) * W + (kw - 1)
                    t = ypad[:, off:off + HW]
                    if kw == 0:
                        t = t * mask_l
                    elif kw == 2:
                        t = t * mask_r
                    taps.append(t)
            patches = jnp.concatenate(taps, axis=0)           # (9*Cm, HW) f32
            y2 = _silu(jnp.dot(w2, patches.astype(MXU_DTYPE),
                               preferred_element_type=jnp.float32) + b2)

            # ---- cv3 (+ fused 1x1 shortcut) + residual + ReLU ---------------
            if cfg["has_sc"]:
                z = jnp.concatenate([y2, x], axis=0).astype(MXU_DTYPE)
                if s > 1:
                    # Fold the stride-s subsample of BOTH cv3 and shortcut
                    # operands into one selection matmul.
                    sel = in_refs[cfg["sel_idx"]][...]        # (HW, Ho*Wo) bf16
                    z = jnp.dot(z, sel, preferred_element_type=jnp.float32
                                ).astype(MXU_DTYPE)           # (Cm+Cin, Ho*Wo)
                y3 = jnp.dot(w3, z, preferred_element_type=jnp.float32) + b3
                x = jnp.maximum(y3, 0.0)
            else:
                y3 = jnp.dot(w3, y2.astype(MXU_DTYPE),
                             preferred_element_type=jnp.float32) + b3
                x = jnp.maximum(y3 + x, 0.0)       # identity shortcut, exact f32

        o_ref[...] = x                                        # (C3, Ho*Wo)

    return kernel


# ----------------------------------------------------------------------------
# Wrapper: NCHW in/out, folds BN, packs params, one pallas_call
# ----------------------------------------------------------------------------
def resnet_layer_forward(x_nchw, params):
    x_nchw = x_nchw.astype(jnp.float32)
    B, Cin0, H0, W0 = x_nchw.shape

    flat_inputs = [x_nchw.reshape(B * Cin0, H0 * W0)]
    in_specs = [pl.BlockSpec((Cin0, H0 * W0), lambda b: (b, 0))]

    def add_input(arr):
        idx = len(flat_inputs)
        flat_inputs.append(arr)
        in_specs.append(
            pl.BlockSpec(arr.shape, lambda b, _nd=arr.ndim: (0,) * _nd))
        return idx

    cfgs = []
    h, w, cin = H0, W0, Cin0
    for blk in params:
        s = blk["s"]
        cm = blk["cv1"]["w"].shape[-1]
        c3 = blk["cv3"]["w"].shape[-1]
        ho = (h - 1) // s + 1
        wo = (w - 1) // s + 1
        has_sc = "sc" in blk
        assert has_sc or s == 1

        # Fold BN scales into (transposed) conv weights; out-channels on rows.
        w1t = (blk["cv1"]["w"].reshape(cin, cm) * blk["cv1"]["scale"][None, :]).T
        w2t = (blk["cv2"]["w"].reshape(9 * cm, cm) * blk["cv2"]["scale"][None, :]).T
        w3t = (blk["cv3"]["w"].reshape(cm, c3) * blk["cv3"]["scale"][None, :]).T
        b3f = blk["cv3"]["bias"]
        if has_sc:
            wsct = (blk["sc"]["w"].reshape(cin, c3) * blk["sc"]["scale"][None, :]).T
            w3t = jnp.concatenate([w3t, wsct], axis=1)        # (c3, cm+cin)
            b3f = b3f + blk["sc"]["bias"]

        # One bf16 weight slab + one f32 bias column per block (few DMAs).
        n_rows = 2 * cm + c3
        n_cols = max(cin, 9 * cm, w3t.shape[1])
        wpack = jnp.zeros((n_rows, n_cols), jnp.float32)
        wpack = wpack.at[0:cm, 0:cin].set(w1t)
        wpack = wpack.at[cm:2 * cm, 0:9 * cm].set(w2t)
        wpack = wpack.at[2 * cm:, 0:w3t.shape[1]].set(w3t)
        bpack = jnp.concatenate(
            [blk["cv1"]["bias"].reshape(cm, 1),
             blk["cv2"]["bias"].reshape(cm, 1),
             b3f.reshape(c3, 1)], axis=0).astype(jnp.float32)

        cfg = dict(H=h, W=w, Ho=ho, Wo=wo, cin=cin, cm=cm, c3=c3, s=s,
                   has_sc=has_sc)
        cfg["w_idx"] = add_input(wpack.astype(MXU_DTYPE))
        cfg["b_idx"] = add_input(bpack)
        if s > 1:
            # 0/1 selection matrix picking the stride-s output positions.
            rows = ((jnp.arange(ho) * s * w)[:, None]
                    + (jnp.arange(wo) * s)[None, :]).reshape(-1)
            sel = (jnp.arange(h * w)[:, None] == rows[None, :]).astype(MXU_DTYPE)
            cfg["sel_idx"] = add_input(sel)                   # (h*w, ho*wo)

        cfgs.append(cfg)
        h, w, cin = ho, wo, c3

    C_final, Ho_out, Wo_out = cin, h, w
    kernel = _make_layer_kernel(cfgs, n_in=len(flat_inputs))

    out2d = pl.pallas_call(
        kernel,
        out_shape=jax.ShapeDtypeStruct((B * C_final, Ho_out * Wo_out),
                                       jnp.float32),
        grid=(B,),
        in_specs=in_specs,
        out_specs=pl.BlockSpec((C_final, Ho_out * Wo_out), lambda b: (b, 0)),
        compiler_params=pltpu.CompilerParams(
            dimension_semantics=("parallel",)),
    )(*flat_inputs)

    return out2d.reshape(B, C_final, Ho_out, Wo_out)            # NCHW


# ----------------------------------------------------------------------------
# Pure-JAX reference (for correctness check)
# ----------------------------------------------------------------------------
def _ref_conv_bn(x, p, k, s, act):
    pad = k // 2
    y = lax.conv_general_dilated(
        x, p["w"], window_strides=(s, s), padding=((pad, pad), (pad, pad)),
        dimension_numbers=("NHWC", "HWIO", "NHWC"),
        precision=lax.Precision.HIGHEST)
    y = y * p["scale"] + p["bias"]
    if act == "silu":
        y = y * jax.nn.sigmoid(y)
    return y


def resnet_layer_ref(x_nchw, params):
    x = jnp.transpose(x_nchw, (0, 2, 3, 1))
    for blk in params:
        s = blk["s"]
        y = _ref_conv_bn(x, blk["cv1"], 1, 1, "silu")
        y = _ref_conv_bn(y, blk["cv2"], 3, s, "silu")
        y = _ref_conv_bn(y, blk["cv3"], 1, 1, "none")
        sc = _ref_conv_bn(x, blk["sc"], 1, s, "none") if "sc" in blk else x
        x = jnp.maximum(y + sc, 0.0)
    return jnp.transpose(x, (0, 3, 1, 2))


# ----------------------------------------------------------------------------
# Deterministic parameter init (conv weight + BatchNorm eval-mode, folded)
# ----------------------------------------------------------------------------
def init_conv_bn(key, c_in, c_out, k):
    kw, kg, kb, km, kv = jax.random.split(key, 5)
    fan_in = k * k * c_in
    w = jax.random.normal(kw, (k, k, c_in, c_out), jnp.float32) / jnp.sqrt(
        jnp.float32(fan_in))
    gamma = 1.0 + 0.1 * jax.random.normal(kg, (c_out,), jnp.float32)
    beta = 0.1 * jax.random.normal(kb, (c_out,), jnp.float32)
    run_mean = 0.1 * jax.random.normal(km, (c_out,), jnp.float32)
    run_var = 1.0 + 0.1 * jax.random.uniform(kv, (c_out,), jnp.float32)
    eps = 1e-5  # nn.BatchNorm2d default
    scale = gamma / jnp.sqrt(run_var + eps)
    bias = beta - run_mean * scale
    return {"w": w, "scale": scale, "bias": bias}


def init_layer_params(key, c_in, c_out, s, n, e):
    params = []
    block_cins = [c_in] + [e * c_out] * (n - 1)
    block_strides = [s] + [1] * (n - 1)
    c3 = e * c_out
    for ci, st in zip(block_cins, block_strides):
        key, k1, k2, k3, k4 = jax.random.split(key, 5)
        blk = {
            "cv1": init_conv_bn(k1, ci, c_out, 1),
            "cv2": init_conv_bn(k2, c_out, c_out, 3),
            "cv3": init_conv_bn(k3, c_out, c3, 1),
            "s": st,
        }
        if st != 1 or ci != c3:
            blk["sc"] = init_conv_bn(k4, ci, c3, 1)
        params.append(blk)
    return params


# ----------------------------------------------------------------------------
# Main
# ----------------------------------------------------------------------------
if __name__ == "__main__":
    key = jax.random.PRNGKey(0)
    kx, kp = jax.random.split(key)

    # ResNetLayer(c_in=8, c_out=8, s=2, is_first=False, n=2, e=4)
    B, C_IN, H, W = 2, 8, 16, 16
    C_OUT, STRIDE, N_BLOCKS, E = 8, 2, 2, 4

    x_nchw = jax.random.normal(kx, (B, C_IN, H, W), jnp.float32)
    params = init_layer_params(kp, C_IN, C_OUT, STRIDE, N_BLOCKS, E)

    out = jax.block_until_ready(resnet_layer_forward(x_nchw, params))
    ref = jax.block_until_ready(resnet_layer_ref(x_nchw, params))

    assert out.shape == ref.shape == (B, E * C_OUT, H // STRIDE, W // STRIDE), out.shape
    max_err = float(jnp.max(jnp.abs(out - ref)))
    # bf16 MXU operands (f32 accumulation/epilogue) vs HIGHEST-precision ref.
    assert max_err < 1e-1, f"max abs error {max_err}"

    print("KERNEL_OK")
</pallas_src>

<mosaic_0001>
module attributes {stable_mosaic.version = 11 : i64} {
  func.func @kernel(%arg0: i32, %arg1: memref<8x256xf32, #tpu.memory_space<vmem>>, %arg2: memref<48x72xbf16, #tpu.memory_space<vmem>>, %arg3: memref<48x1xf32, #tpu.memory_space<vmem>>, %arg4: memref<256x64xbf16, #tpu.memory_space<vmem>>, %arg5: memref<48x72xbf16, #tpu.memory_space<vmem>>, %arg6: memref<48x1xf32, #tpu.memory_space<vmem>>, %arg7: memref<32x64xf32, #tpu.memory_space<vmem>>) attributes {dimension_semantics = [#tpu.dimension_semantics<parallel>], iteration_bounds = array<i64: 2>, scalar_prefetch = 0 : i64, scratch_operands = 0 : i64, tpu.core_type = #tpu.core_type<tc>, window_params = [{transform_indices = @transform_0, window_bounds = array<i64: 8, 256>}, {pipeline_mode = #tpu.pipeline_mode<synchronous>, transform_indices = @transform_1, window_bounds = array<i64: 48, 72>}, {pipeline_mode = #tpu.pipeline_mode<synchronous>, transform_indices = @transform_2, window_bounds = array<i64: 48, 1>}, {pipeline_mode = #tpu.pipeline_mode<synchronous>, transform_indices = @transform_3, window_bounds = array<i64: 256, 64>}, {pipeline_mode = #tpu.pipeline_mode<synchronous>, transform_indices = @transform_4, window_bounds = array<i64: 48, 72>}, {pipeline_mode = #tpu.pipeline_mode<synchronous>, transform_indices = @transform_5, window_bounds = array<i64: 48, 1>}, {transform_indices = @transform_6, window_bounds = array<i64: 32, 64>}]} {
    %c0 = arith.constant 0 : index
    %c0_0 = arith.constant 0 : index
    %0 = vector.load %arg1[%c0, %c0_0] : memref<8x256xf32, #tpu.memory_space<vmem>>, vector<8x256xf32>
    %c0_1 = arith.constant 0 : index
    %c0_2 = arith.constant 0 : index
    %1 = vector.load %arg2[%c0_1, %c0_2] : memref<48x72xbf16, #tpu.memory_space<vmem>>, vector<48x72xbf16>
    %c0_3 = arith.constant 0 : index
    %c0_4 = arith.constant 0 : index
    %2 = vector.load %arg3[%c0_3, %c0_4] : memref<48x1xf32, #tpu.memory_space<vmem>>, vector<48x1xf32>
    %3 = vector.extract_strided_slice %1 {offsets = [0, 0], sizes = [8, 8], strides = [1, 1]} : vector<48x72xbf16> to vector<8x8xbf16>
    %4 = vector.extract_strided_slice %1 {offsets = [8, 0], sizes = [8, 72], strides = [1, 1]} : vector<48x72xbf16> to vector<8x72xbf16>
    %5 = vector.extract_strided_slice %1 {offsets = [16, 0], sizes = [32, 16], strides = [1, 1]} : vector<48x72xbf16> to vector<32x16xbf16>
    %6 = vector.extract_strided_slice %2 {offsets = [0, 0], sizes = [8, 1], strides = [1, 1]} : vector<48x1xf32> to vector<8x1xf32>
    %7 = vector.extract_strided_slice %2 {offsets = [8, 0], sizes = [8, 1], strides = [1, 1]} : vector<48x1xf32> to vector<8x1xf32>
    %8 = vector.extract_strided_slice %2 {offsets = [16, 0], sizes = [32, 1], strides = [1, 1]} : vector<48x1xf32> to vector<32x1xf32>
    %9 = arith.truncf %0 : vector<8x256xf32> to vector<8x256xbf16>
    %cst = arith.constant dense<0.000000e+00> : vector<8x256xf32>
    %10 = tpu.matmul %3, %9, %cst {dimension_numbers = #tpu.dot_dimension_numbers<[1], [0], [0], [1], [0, 0, 1, 1], [], []>} : vector<8x8xbf16>, vector<8x256xbf16>, vector<8x256xf32> -> vector<8x256xf32>
    %11 = vector.broadcast %6 : vector<8x1xf32> to vector<8x256xf32>
    %12 = arith.addf %10, %11 : vector<8x256xf32>
    %13 = arith.negf %12 : vector<8x256xf32>
    %14 = math.exp %13 : vector<8x256xf32>
    %cst_5 = arith.constant 1.000000e+00 : f32
    %15 = vector.broadcast %cst_5 : f32 to vector<8x256xf32>
    %16 = arith.addf %15, %14 : vector<8x256xf32>
    %17 = arith.divf %15, %16 : vector<8x256xf32>
    %18 = arith.mulf %12, %17 : vector<8x256xf32>
    %cst_6 = arith.constant 0.000000e+00 : f32
    %19 = vector.broadcast %cst_6 : f32 to vector<8x17xf32>
    %20 = tpu.concatenate %19, %18, %19 in 1 : vector<8x17xf32>, vector<8x256xf32>, vector<8x17xf32> -> vector<8x290xf32>
    %21 = tpu.iota {dimensions = array<i32: 1>} : vector<1x256xi32>
    %c16_i32 = arith.constant 16 : i32
    %c0_i32 = arith.constant 0 : i32
    %22 = arith.cmpi eq, %c16_i32, %c0_i32 : i32
    %c1_i32 = arith.constant 1 : i32
    %23 = arith.select %22, %c1_i32, %c16_i32 : i32
    %24 = vector.broadcast %23 : i32 to vector<1x256xi32>
    %25 = arith.remsi %21, %24 : vector<1x256xi32>
    %c0_i32_7 = arith.constant 0 : i32
    %26 = vector.broadcast %c0_i32_7 : i32 to vector<1x256xi32>
    %27 = arith.cmpi ne, %25, %26 : vector<1x256xi32>
    %c0_i32_8 = arith.constant 0 : i32
    %28 = vector.broadcast %c0_i32_8 : i32 to vector<1x256xi32>
    %29 = arith.cmpi slt, %25, %28 : vector<1x256xi32>
    %c0_i32_9 = arith.constant 0 : i32
    %30 = arith.cmpi slt, %23, %c0_i32_9 : i32
    %31 = vector.broadcast %30 : i1 to vector<1x256xi1>
    %32 = vector.broadcast %31 : vector<1x256xi1> to vector<1x256xi1>
    %33 = arith.xori %29, %32 : vector<1x256xi1>
    %34 = arith.andi %33, %27 : vector<1x256xi1>
    %35 = vector.broadcast %23 : i32 to vector<1x256xi32>
    %36 = arith.addi %25, %35 : vector<1x256xi32>
    %37 = arith.select %34, %36, %25 : vector<1x256xi1>, vector<1x256xi32>
    %c0_i32_10 = arith.constant 0 : i32
    %38 = vector.broadcast %c0_i32_10 : i32 to vector<1x256xi32>
    %39 = arith.cmpi ne, %37, %38 : vector<1x256xi32>
    %40 = arith.extui %39 : vector<1x256xi1> to vector<1x256xi32>
    %41 = arith.sitofp %40 : vector<1x256xi32> to vector<1x256xf32>
    %c15_i32 = arith.constant 15 : i32
    %42 = vector.broadcast %c15_i32 : i32 to vector<1x256xi32>
    %43 = arith.cmpi ne, %37, %42 : vector<1x256xi32>
    %44 = arith.extui %43 : vector<1x256xi1> to vector<1x256xi32>
    %45 = arith.sitofp %44 : vector<1x256xi32> to vector<1x256xf32>
    %46 = vector.extract_strided_slice %20 {offsets = [0, 0], sizes = [8, 256], strides = [1, 1]} : vector<8x290xf32> to vector<8x256xf32>
    %47 = vector.broadcast %41 : vector<1x256xf32> to vector<8x256xf32>
    %48 = arith.mulf %46, %47 : vector<8x256xf32>
    %49 = vector.extract_strided_slice %20 {offsets = [0, 1], sizes = [8, 256], strides = [1, 1]} : vector<8x290xf32> to vector<8x256xf32>
    %50 = vector.extract_strided_slice %20 {offsets = [0, 2], sizes = [8, 256], strides = [1, 1]} : vector<8x290xf32> to vector<8x256xf32>
    %51 = vector.broadcast %45 : vector<1x256xf32> to vector<8x256xf32>
    %52 = arith.mulf %50, %51 : vector<8x256xf32>
    %53 = vector.extract_strided_slice %20 {offsets = [0, 16], sizes = [8, 256], strides = [1, 1]} : vector<8x290xf32> to vector<8x256xf32>
    %54 = vector.broadcast %41 : vector<1x256xf32> to vector<8x256xf32>
    %55 = arith.mulf %53, %54 : vector<8x256xf32>
    %56 = vector.extract_strided_slice %20 {offsets = [0, 17], sizes = [8, 256], strides = [1, 1]} : vector<8x290xf32> to vector<8x256xf32>
    %57 = vector.extract_strided_slice %20 {offsets = [0, 18], sizes = [8, 256], strides = [1, 1]} : vector<8x290xf32> to vector<8x256xf32>
    %58 = vector.broadcast %45 : vector<1x256xf32> to vector<8x256xf32>
    %59 = arith.mulf %57, %58 : vector<8x256xf32>
    %60 = vector.extract_strided_slice %20 {offsets = [0, 32], sizes = [8, 256], strides = [1, 1]} : vector<8x290xf32> to vector<8x256xf32>
    %61 = vector.broadcast %41 : vector<1x256xf32> to vector<8x256xf32>
    %62 = arith.mulf %60, %61 : vector<8x256xf32>
    %63 = vector.extract_strided_slice %20 {offsets = [0, 33], sizes = [8, 256], strides = [1, 1]} : vector<8x290xf32> to vector<8x256xf32>
    %64 = vector.extract_strided_slice %20 {offsets = [0, 34], sizes = [8, 256], strides = [1, 1]} : vector<8x290xf32> to vector<8x256xf32>
    %65 = vector.broadcast %45 : vector<1x256xf32> to vector<8x256xf32>
    %66 = arith.mulf %64, %65 : vector<8x256xf32>
    %67 = tpu.concatenate %48, %49, %52, %55, %56, %59, %62, %63, %66 in 0 : vector<8x256xf32>, vector<8x256xf32>, vector<8x256xf32>, vector<8x256xf32>, vector<8x256xf32>, vector<8x256xf32>, vector<8x256xf32>, vector<8x256xf32>, vector<8x256xf32> -> vector<72x256xf32>
    %68 = arith.truncf %67 : vector<72x256xf32> to vector<72x256xbf16>
    %cst_11 = arith.constant dense<0.000000e+00> : vector<8x256xf32>
    %69 = tpu.matmul %4, %68, %cst_11 {dimension_numbers = #tpu.dot_dimension_numbers<[1], [0], [0], [1], [0, 0, 1, 1], [], []>} : vector<8x72xbf16>, vector<72x256xbf16>, vector<8x256xf32> -> vector<8x256xf32>
    %70 = vector.broadcast %7 : vector<8x1xf32> to vector<8x256xf32>
    %71 = arith.addf %69, %70 : vector<8x256xf32>
    %72 = arith.negf %71 : vector<8x256xf32>
    %73 = math.exp %72 : vector<8x256xf32>
    %cst_12 = arith.constant 1.000000e+00 : f32
    %74 = vector.broadcast %cst_12 : f32 to vector<8x256xf32>
    %75 = arith.addf %74, %73 : vector<8x256xf32>
    %76 = arith.divf %74, %75 : vector<8x256xf32>
    %77 = arith.mulf %71, %76 : vector<8x256xf32>
    %78 = tpu.concatenate %77, %0 in 0 : vector<8x256xf32>, vector<8x256xf32> -> vector<16x256xf32>
    %79 = arith.truncf %78 : vector<16x256xf32> to vector<16x256xbf16>
    %c0_13 = arith.constant 0 : index
    %c0_14 = arith.constant 0 : index
    %80 = vector.load %arg4[%c0_13, %c0_14] : memref<256x64xbf16, #tpu.memory_space<vmem>>, vector<256x64xbf16>
    %cst_15 = arith.constant dense<0.000000e+00> : vector<16x64xf32>
    %81 = tpu.matmul %79, %80, %cst_15 {dimension_numbers = #tpu.dot_dimension_numbers<[1], [0], [0], [1], [0, 0, 1, 1], [], []>} : vector<16x256xbf16>, vector<256x64xbf16>, vector<16x64xf32> -> vector<16x64xf32>
    %82 = arith.truncf %81 : vector<16x64xf32> to vector<16x64xbf16>
    %cst_16 = arith.constant dense<0.000000e+00> : vector<32x64xf32>
    %83 = tpu.matmul %5, %82, %cst_16 {dimension_numbers = #tpu.dot_dimension_numbers<[1], [0], [0], [1], [0, 0, 1, 1], [], []>} : vector<32x16xbf16>, vector<16x64xbf16>, vector<32x64xf32> -> vector<32x64xf32>
    %84 = vector.broadcast %8 : vector<32x1xf32> to vector<32x64xf32>
    %85 = arith.addf %83, %84 : vector<32x64xf32>
    %cst_17 = arith.constant 0.000000e+00 : f32
    %86 = vector.broadcast %cst_17 : f32 to vector<32x64xf32>
    %87 = arith.maximumf %85, %86 : vector<32x64xf32>
    %c0_18 = arith.constant 0 : index
    %c0_19 = arith.constant 0 : index
    %88 = vector.load %arg5[%c0_18, %c0_19] : memref<48x72xbf16, #tpu.memory_space<vmem>>, vector<48x72xbf16>
    %c0_20 = arith.constant 0 : index
    %c0_21 = arith.constant 0 : index
    %89 = vector.load %arg6[%c0_20, %c0_21] : memref<48x1xf32, #tpu.memory_space<vmem>>, vector<48x1xf32>
    %90 = vector.extract_strided_slice %88 {offsets = [0, 0], sizes = [8, 32], strides = [1, 1]} : vector<48x72xbf16> to vector<8x32xbf16>
    %91 = vector.extract_strided_slice %88 {offsets = [8, 0], sizes = [8, 72], strides = [1, 1]} : vector<48x72xbf16> to vector<8x72xbf16>
    %92 = vector.extract_strided_slice %88 {offsets = [16, 0], sizes = [32, 8], strides = [1, 1]} : vector<48x72xbf16> to vector<32x8xbf16>
    %93 = vector.extract_strided_slice %89 {offsets = [0, 0], sizes = [8, 1], strides = [1, 1]} : vector<48x1xf32> to vector<8x1xf32>
    %94 = vector.extract_strided_slice %89 {offsets = [8, 0], sizes = [8, 1], strides = [1, 1]} : vector<48x1xf32> to vector<8x1xf32>
    %95 = vector.extract_strided_slice %89 {offsets = [16, 0], sizes = [32, 1], strides = [1, 1]} : vector<48x1xf32> to vector<32x1xf32>
    %96 = arith.truncf %87 : vector<32x64xf32> to vector<32x64xbf16>
    %cst_22 = arith.constant dense<0.000000e+00> : vector<8x64xf32>
    %97 = tpu.matmul %90, %96, %cst_22 {dimension_numbers = #tpu.dot_dimension_numbers<[1], [0], [0], [1], [0, 0, 1, 1], [], []>} : vector<8x32xbf16>, vector<32x64xbf16>, vector<8x64xf32> -> vector<8x64xf32>
    %98 = vector.broadcast %93 : vector<8x1xf32> to vector<8x64xf32>
    %99 = arith.addf %97, %98 : vector<8x64xf32>
    %100 = arith.negf %99 : vector<8x64xf32>
    %101 = math.exp %100 : vector<8x64xf32>
    %cst_23 = arith.constant 1.000000e+00 : f32
    %102 = vector.broadcast %cst_23 : f32 to vector<8x64xf32>
    %103 = arith.addf %102, %101 : vector<8x64xf32>
    %104 = arith.divf %102, %103 : vector<8x64xf32>
    %105 = arith.mulf %99, %104 : vector<8x64xf32>
    %cst_24 = arith.constant 0.000000e+00 : f32
    %106 = vector.broadcast %cst_24 : f32 to vector<8x9xf32>
    %107 = tpu.concatenate %106, %105, %106 in 1 : vector<8x9xf32>, vector<8x64xf32>, vector<8x9xf32> -> vector<8x82xf32>
    %108 = tpu.iota {dimensions = array<i32: 1>} : vector<1x64xi32>
    %c8_i32 = arith.constant 8 : i32
    %c0_i32_25 = arith.constant 0 : i32
    %109 = arith.cmpi eq, %c8_i32, %c0_i32_25 : i32
    %c1_i32_26 = arith.constant 1 : i32
    %110 = arith.select %109, %c1_i32_26, %c8_i32 : i32
    %111 = vector.broadcast %110 : i32 to vector<1x64xi32>
    %112 = arith.remsi %108, %111 : vector<1x64xi32>
    %c0_i32_27 = arith.constant 0 : i32
    %113 = vector.broadcast %c0_i32_27 : i32 to vector<1x64xi32>
    %114 = arith.cmpi ne, %112, %113 : vector<1x64xi32>
    %c0_i32_28 = arith.constant 0 : i32
    %115 = vector.broadcast %c0_i32_28 : i32 to vector<1x64xi32>
    %116 = arith.cmpi slt, %112, %115 : vector<1x64xi32>
    %c0_i32_29 = arith.constant 0 : i32
    %117 = arith.cmpi slt, %110, %c0_i32_29 : i32
    %118 = vector.broadcast %117 : i1 to vector<1x64xi1>
    %119 = vector.broadcast %118 : vector<1x64xi1> to vector<1x64xi1>
    %120 = arith.xori %116, %119 : vector<1x64xi1>
    %121 = arith.andi %120, %114 : vector<1x64xi1>
    %122 = vector.broadcast %110 : i32 to vector<1x64xi32>
    %123 = arith.addi %112, %122 : vector<1x64xi32>
    %124 = arith.select %121, %123, %112 : vector<1x64xi1>, vector<1x64xi32>
    %c0_i32_30 = arith.constant 0 : i32
    %125 = vector.broadcast %c0_i32_30 : i32 to vector<1x64xi32>
    %126 = arith.cmpi ne, %124, %125 : vector<1x64xi32>
    %127 = arith.extui %126 : vector<1x64xi1> to vector<1x64xi32>
    %128 = arith.sitofp %127 : vector<1x64xi32> to vector<1x64xf32>
    %c7_i32 = arith.constant 7 : i32
    %129 = vector.broadcast %c7_i32 : i32 to vector<1x64xi32>
    %130 = arith.cmpi ne, %124, %129 : vector<1x64xi32>
    %131 = arith.extui %130 : vector<1x64xi1> to vector<1x64xi32>
    %132 = arith.sitofp %131 : vector<1x64xi32> to vector<1x64xf32>
    %133 = vector.extract_strided_slice %107 {offsets = [0, 0], sizes = [8, 64], strides = [1, 1]} : vector<8x82xf32> to vector<8x64xf32>
    %134 = vector.broadcast %128 : vector<1x64xf32> to vector<8x64xf32>
    %135 = arith.mulf %133, %134 : vector<8x64xf32>
    %136 = vector.extract_strided_slice %107 {offsets = [0, 1], sizes = [8, 64], strides = [1, 1]} : vector<8x82xf32> to vector<8x64xf32>
    %137 = vector.extract_strided_slice %107 {offsets = [0, 2], sizes = [8, 64], strides = [1, 1]} : vector<8x82xf32> to vector<8x64xf32>
    %138 = vector.broadcast %132 : vector<1x64xf32> to vector<8x64xf32>
    %139 = arith.mulf %137, %138 : vector<8x64xf32>
    %140 = vector.extract_strided_slice %107 {offsets = [0, 8], sizes = [8, 64], strides = [1, 1]} : vector<8x82xf32> to vector<8x64xf32>
    %141 = vector.broadcast %128 : vector<1x64xf32> to vector<8x64xf32>
    %142 = arith.mulf %140, %141 : vector<8x64xf32>
    %143 = vector.extract_strided_slice %107 {offsets = [0, 9], sizes = [8, 64], strides = [1, 1]} : vector<8x82xf32> to vector<8x64xf32>
    %144 = vector.extract_strided_slice %107 {offsets = [0, 10], sizes = [8, 64], strides = [1, 1]} : vector<8x82xf32> to vector<8x64xf32>
    %145 = vector.broadcast %132 : vector<1x64xf32> to vector<8x64xf32>
    %146 = arith.mulf %144, %145 : vector<8x64xf32>
    %147 = vector.extract_strided_slice %107 {offsets = [0, 16], sizes = [8, 64], strides = [1, 1]} : vector<8x82xf32> to vector<8x64xf32>
    %148 = vector.broadcast %128 : vector<1x64xf32> to vector<8x64xf32>
    %149 = arith.mulf %147, %148 : vector<8x64xf32>
    %150 = vector.extract_strided_slice %107 {offsets = [0, 17], sizes = [8, 64], strides = [1, 1]} : vector<8x82xf32> to vector<8x64xf32>
    %151 = vector.extract_strided_slice %107 {offsets = [0, 18], sizes = [8, 64], strides = [1, 1]} : vector<8x82xf32> to vector<8x64xf32>
    %152 = vector.broadcast %132 : vector<1x64xf32> to vector<8x64xf32>
    %153 = arith.mulf %151, %152 : vector<8x64xf32>
    %154 = tpu.concatenate %135, %136, %139, %142, %143, %146, %149, %150, %153 in 0 : vector<8x64xf32>, vector<8x64xf32>, vector<8x64xf32>, vector<8x64xf32>, vector<8x64xf32>, vector<8x64xf32>, vector<8x64xf32>, vector<8x64xf32>, vector<8x64xf32> -> vector<72x64xf32>
    %155 = arith.truncf %154 : vector<72x64xf32> to vector<72x64xbf16>
    %cst_31 = arith.constant dense<0.000000e+00> : vector<8x64xf32>
    %156 = tpu.matmul %91, %155, %cst_31 {dimension_numbers = #tpu.dot_dimension_numbers<[1], [0], [0], [1], [0, 0, 1, 1], [], []>} : vector<8x72xbf16>, vector<72x64xbf16>, vector<8x64xf32> -> vector<8x64xf32>
    %157 = vector.broadcast %94 : vector<8x1xf32> to vector<8x64xf32>
    %158 = arith.addf %156, %157 : vector<8x64xf32>
    %159 = arith.negf %158 : vector<8x64xf32>
    %160 = math.exp %159 : vector<8x64xf32>
    %cst_32 = arith.constant 1.000000e+00 : f32
    %161 = vector.broadcast %cst_32 : f32 to vector<8x64xf32>
    %162 = arith.addf %161, %160 : vector<8x64xf32>
    %163 = arith.divf %161, %162 : vector<8x64xf32>
    %164 = arith.mulf %158, %163 : vector<8x64xf32>
    %165 = arith.truncf %164 : vector<8x64xf32> to vector<8x64xbf16>
    %cst_33 = arith.constant dense<0.000000e+00> : vector<32x64xf32>
    %166 = tpu.matmul %92, %165, %cst_33 {dimension_numbers = #tpu.dot_dimension_numbers<[1], [0], [0], [1], [0, 0, 1, 1], [], []>} : vector<32x8xbf16>, vector<8x64xbf16>, vector<32x64xf32> -> vector<32x64xf32>
    %167 = vector.broadcast %95 : vector<32x1xf32> to vector<32x64xf32>
    %168 = arith.addf %166, %167 : vector<32x64xf32>
    %169 = arith.addf %168, %87 : vector<32x64xf32>
    %cst_34 = arith.constant 0.000000e+00 : f32
    %170 = vector.broadcast %cst_34 : f32 to vector<32x64xf32>
    %171 = arith.maximumf %169, %170 : vector<32x64xf32>
    %c0_35 = arith.constant 0 : index
    %c0_36 = arith.constant 0 : index
    %172 = vector.load %arg7[%c0_35, %c0_36] : memref<32x64xf32, #tpu.memory_space<vmem>>, vector<32x64xf32>
    tpu.vector_store %arg7[%c0_35, %c0_36], %171 {strides = array<i32>} : memref<32x64xf32, #tpu.memory_space<vmem>>, vector<32x64xf32>,
    return
  }
  func.func @transform_0(%arg0: i32) -> (i32, i32) {
    %c0_i32 = arith.constant 0 : i32
    %c0_i32_0 = arith.constant 0 : i32
    return %arg0, %c0_i32 : i32, i32
  }
  func.func @transform_1(%arg0: i32) -> (i32, i32) {
    %c0_i32 = arith.constant 0 : i32
    %c0_i32_0 = arith.constant 0 : i32
    %c0_i32_1 = arith.constant 0 : i32
    return %c0_i32, %c0_i32_0 : i32, i32
  }
  func.func @transform_2(%arg0: i32) -> (i32, i32) {
    %c0_i32 = arith.constant 0 : i32
    %c0_i32_0 = arith.constant 0 : i32
    %c0_i32_1 = arith.constant 0 : i32
    return %c0_i32, %c0_i32_0 : i32, i32
  }
  func.func @transform_3(%arg0: i32) -> (i32, i32) {
    %c0_i32 = arith.constant 0 : i32
    %c0_i32_0 = arith.constant 0 : i32
    %c0_i32_1 = arith.constant 0 : i32
    return %c0_i32, %c0_i32_0 : i32, i32
  }
  func.func @transform_4(%arg0: i32) -> (i32, i32) {
    %c0_i32 = arith.constant 0 : i32
    %c0_i32_0 = arith.constant 0 : i32
    %c0_i32_1 = arith.constant 0 : i32
    return %c0_i32, %c0_i32_0 : i32, i32
  }
  func.func @transform_5(%arg0: i32) -> (i32, i32) {
    %c0_i32 = arith.constant 0 : i32
    %c0_i32_0 = arith.constant 0 : i32
    %c0_i32_1 = arith.constant 0 : i32
    return %c0_i32, %c0_i32_0 : i32, i32
  }
  func.func @transform_6(%arg0: i32) -> (i32, i32) {
    %c0_i32 = arith.constant 0 : i32
    %c0_i32_0 = arith.constant 0 : i32
    return %arg0, %c0_i32 : i32, i32
  }
}

</mosaic_0001>

<bundles_post_ra>
// kernel: tpu_custom_call.1
= control target key start
LH: loop header
LB: loop body
LE: loop exit
PB: predicated region body
PF: predicated region fallthrough
CT: control target
= control target key end

     0   :  { %11 = vsyncpa [#allocation3], 0  ;;  %s1974_s0 = inlined_call_operand.vmem [shape: f32[16,256], index: 0, kind: input, shape index: {}]   ;;  %s1975_s1 = inlined_call_operand.vmem [shape: bf16[48,72], index: 1, kind: input, shape index: {}]   ;;  %s1976_s2 = inlined_call_operand.vmem [shape: f32[48,1], index: 2, kind: input, shape index: {}]   ;;  %s1977_s3 = inlined_call_operand.vmem [shape: bf16[256,64], index: 3, kind: input, shape index: {}]   ;;  %s1978_s4 = inlined_call_operand.vmem [shape: bf16[48,72], index: 4, kind: input, shape index: {}]   ;;  %s1979_s5 = inlined_call_operand.vmem [shape: f32[48,1], index: 5, kind: input, shape index: {}]   ;;  %s1980_s6 = inlined_call_operand.hbm [shape: f32[64,64], index: 6, kind: output, shape index: {}]  }
   0x1   :  { %13 = vsyncpa [#allocation3 + $0x1], 0  ;;  %s1628_s21 = smov 0   ;;  %s1630_s22 = smov 0  }
   0x2   :  { %s1632_s23 = smov 0   ;;  %s1634_s24 = smov 0  }
   0x3 LB: > { %s1649_s25 = sadd.s32 4294967295, %s1568_s24   ;;  %s1215_s26 = sadd.s32 4294967294, %s1568_s24   ;;  %s1568_s24 = sphi %s1634_s24, %s1992_s24   ;;  %s1564_s23 = sphi %s1632_s23, %s1991_s23   ;;  %s1560_s22 = sphi %s1630_s22, %s1990_s22   ;;  %s1556_s21 = sphi %s1628_s21, %s1989_s21  }
   0x4   : > { %s1653_s27 = sadd.s32 1, %s1568_s24   ;;  %s157_s28 = sadd.s32 1, %s1564_s23 }
   0x5   : > { %s154_s29 = ssub.s32 %s1568_s24, %s1653_s27  ;;  %p167_p0 = scmp.ne.s32.totalorder %s1564_s23, %s1560_s22 }
   0x6   : > { %p155_p1 = scmp.eq.s32.totalorder %s154_s29, 0  ;;  %p168_p2 = scmp.eq.s32.totalorder %s1649_s25, 1 }
   0x7   : > { %p173_p3 = scmp.ne.s32.totalorder %s1560_s22, %s1556_s21  ;;  %p174_p4 = scmp.eq.s32.totalorder %s1215_s26, 1 }
   0x8   : > { %s1664_s30 = scalar_select %p155_p1, %s1564_s23, %s157_s28  }
   0x9   : > { %p1666_p5 = por %p168_p2, %p167_p0  ;;  %p1670_p6 = por %p174_p4, %p173_p3 }
   0xa   : > { %p1218_p7 = scmp.ge.s32.totalorder %s1568_s24, 1  ;;  %p215_p8 = scmp.lt.s32.totalorder %s1568_s24, 3 }
   0xc   : > { %p216_p9 = pnand %p1218_p7, %p215_p8 }
   0xd   : > { %p245_p10 = scmp.lt.s32.totalorder (!%p216_p9), %s1649_s25, 1  ;;  %s1572_s18 = smov (!%p216_p9), 32  }
   0xe   : > { %219 = sbr.rel (%p216_p9) target bundleno = 1677 (0x68d), region = 44  ;;  %s1573_s19 = smov (!%p216_p9), 18  }
   0xf   : > { %s1574_s20 = smov (!%p216_p9), 17   ;;  %s1575_s26 = smov (!%p216_p9), 2  }
  0x10   : > { %s1576_s28 = smov (!%p216_p9), 34   ;;  %s1577_s29 = smov (!%p216_p9), 16  }
  0x11   : > { %s1578_s9 = smov (!%p216_p9), 95   ;;  %s1579_s10 = smov (!%p216_p9), 111  }
  0x12   : > { %s1582_s13 = smov (!%p216_p9), 110   ;;  %s1982_s14 = smov (!%p216_p9), 126  }
  0x13   : > { %v1570_v0 = vmov 0   ;;  %v260_v1 = vld [vmem:[%s1976_s2] sm:$0xff]  ;;  %s246_s11 = scalar_select %p245_p10, %s1649_s25, 1  ;;  %vm277_vm0 = vcmask 1043456   ;;  %vm273_vm1 = vcmask 64512   ;;  %v363_v10 = vlaneseq }
  0x14   : > { %1414 = vset.pattern.permute.xlu0 %v1570_v0  ;;  %1480 = vset.pattern.permute.xlu1 %v1570_v0  ;;  %v254_v8 = vld [vmem:[%s1975_s1] sm:$0xf]  ;;  %v1571_v24 = vmov 0.0   ;;  %vm356_vm14 = vcmask 138240   ;;  %vm448_vm15 = vcmask 261120   ;;  %s1983_s16 = smov 112  }
  0x15   : > { %270 = vperm.xlu0 %1414, %v260_v1   ;;  %1481 = vset.pattern.permute.xlu2 %v1570_v0  ;;  %s1329_s12 = sshll.u32 %s246_s11, 4  ;;  %v1699_v13 = vand.u32 127, %v363_v10  ;;  %s1580_s11 = smov 96  }
  0x16   : > { %s249_s15 = scalar_lea.vmem %s1974_s0, %s1329_s12  ;;  %s1581_s12 = smov 94  }
  0x17   : > { %v1684_v2 = vld [vmem:[%s249_s15] sm:$0xff]  ;;  %v1686_v3 = vld [vmem:[%s249_s15 + $0x8] sm:$0xff]  ;;  %v365_v18 = vadd.s32 128, %v1699_v13  ;;  %v370_v21 = vand.u32 15, %v1699_v13  ;;  %s1981_s15 = smov 127  }
  0x18   : > { %v266_v4 = vpack.c.bf16 %v1684_v2, %v1684_v2  ;;  %v267_v5 = vpack.c.bf16 %v1686_v3, %v1686_v3 }
  0x19   : > { %v377_v22 = vand.u32 15, %v365_v18  ;;  %vm390_vm2 = vcmp.ne.s32.totalorder %v370_v21, 0  ;;  %vm396_vm4 = vcmp.ne.s32.totalorder %v370_v21, 15 }
  0x1a   : > { %v279_v6 = vsel %vm277_vm0, %v266_v4, 0  ;;  %v282_v7 = vsel %vm277_vm0, %v267_v5, 0  ;;  %v1704_v25 = vsel %vm390_vm2, 1.0, %v1571_v24  ;;  %v1228_v31 = vsel %vm396_vm4, 1.0, %v1571_v24 }
  0x1b   : > { %291 = vmatpush.bf16.msra.mxu0 %v279_v6  ;;  %304 = vmatpush.bf16.msra.mxu1 %v282_v7  ;;  %vm391_vm3 = vcmp.ne.s32.totalorder %v377_v22, 0  ;;  %vm397_vm5 = vcmp.ne.s32.totalorder %v377_v22, 15  ;;  %vm436_vm2 = vcmask 146432   ;;  %vm410_vm4 = vcmask 15360  }
  0x1c   : > { %v1707_v26 = vsel %vm391_vm3, 1.0, %v1571_v24  ;;  %v1229_v32 = vsel %vm397_vm5, 1.0, %v1571_v24  ;;  %vm460_vm3 = vcmask 277504   ;;  %vm424_vm5 = vcmask 130048  }
  0x1d   : > { %v1420_v29 = vpack.i.bf16 %v1707_v26, %v1704_v25  ;;  %v1425_v33 = vpack.i.bf16 %v1229_v32, %v1228_v31 }
  0x1e   : > { %1222 = vmatmul.msk.bf16.vlgmr.msra.gmra.mxu0 %vm273_vm1, %v254_v8  ;;  %1223 = vmatmul.msk.bf16.vlgmr.msra.gmra.mxu1 %vm273_vm1, %v254_v8 }
  0x1f   : > { %1421 = vrot.lane.b32.xlu2 %v1420_v29, %s1572_s18  ;;  %s242_s18 = sand.u32 1, %s1560_s22  }
  0x27   : > { %1426 = vrot.lane.b32.xlu2 %v1425_v33, %s1573_s19 }
  0x79   : > { %v1422_v56 = vpop.permute.xlu2 %1421 }
  0x7a   : > { %v1424_v57 = vunpack.i.h.bf16 %v1422_v56  ;;  %v1423_v58 = vunpack.i.l.bf16 %v1422_v56 }
  0x7c   : > { %v449_v62 = vsel %vm448_vm15, %v1423_v58, %v1424_v57 }
  0x81   : > { %v1427_v1 = vpop.permute.xlu2 %1426 }
  0x82   : > { %v1429_v7 = vunpack.i.h.bf16 %v1427_v1  ;;  %v1428_v8 = vunpack.i.l.bf16 %v1427_v1 }
  0x87   : > { %v271_v9 = vpop.permute.xlu0 %270 }
  0x9b   : > { %v293_v11 = vpop.f32.mrf.mxu0  ;;  %v306_v12 = vpop.f32.mrf.mxu1 }
  0x9c   : > { %v294_v14 = vadd.f32 %v293_v11, %v271_v9  ;;  %v307_v15 = vadd.f32 %v306_v12, %v271_v9  ;;  %v437_v11 = vsel %vm436_vm2, %v1428_v8, %v1429_v7 }
  0x9e   : > { %v1224_v16 = vmul.f32 -1.442695, %v294_v14  ;;  %v1225_v17 = vmul.f32 -1.442695, %v307_v15 }
  0xa0   : > { %1482 = vpow2.f32 %v1224_v16 }
  0xa1   : > { %1484 = vpow2.f32 %v1225_v17 }
  0xa3   : > { %v295_v19 = vpop.f32.mrf.mxu0  ;;  %v308_v20 = vpop.f32.mrf.mxu1 }
  0xa6   : > { %v1483_v23 = vpop.eup %1482 }
  0xa7   : > { %v1485_v27 = vpop.eup %1484  ;;  %v316_v28 = vadd.f32 1.0, %v1483_v23 }
  0xa8   : > { %v317_v30 = vadd.f32 1.0, %v1485_v27 }
  0xa9   : > { %1486 = vrcp.f32 %v316_v28  ;;  %v329_v39 = vand.u32 2147483648, %v316_v28  ;;  %v327_v42 = vand.u32 2147483647, %v316_v28  ;;  %vm323_vm8 = vweird.f32 %v316_v28 }
  0xaa   : > { %1488 = vrcp.f32 %v317_v30  ;;  %v344_v43 = vand.u32 2147483648, %v317_v30  ;;  %v342_v45 = vand.u32 2147483647, %v317_v30  ;;  %vm338_vm10 = vweird.f32 %v317_v30 }
  0xab   : > { %v330_v47 = vor.u32 1.1754944e-38, %v329_v39  ;;  %vm328_vm11 = vcmp.eq.f32.partialorder %v327_v42, 8.507059e+37 }
  0xac   : > { %v345_v50 = vor.u32 1.1754944e-38, %v344_v43  ;;  %vm343_vm13 = vcmp.eq.f32.partialorder %v342_v45, 8.507059e+37  ;;  %v262_v45 = vld [vmem:[%s1976_s2 + $0x10] sm:$0xff] }
  0xaf   : > { %v1487_v34 = vpop.eup %1486 }
  0xb0   : > { %v1489_v35 = vpop.eup %1488  ;;  %v319_v36 = vmul.f32 %v1487_v34, %v316_v28  ;;  %vm324_vm6 = vweird.f32 %v1487_v34 }
  0xb1   : > { %v334_v37 = vmul.f32 %v1489_v35, %v317_v30  ;;  %vm339_vm7 = vweird.f32 %v1489_v35  ;;  %vm325_vm9 = vmor %vm323_vm8, %vm324_vm6  ;;  %vm568_vm6 = vcmask 769024   ;;  %vm554_vm8 = vcmask 777216  }
  0xb2   : > { %v320_v38 = vsub.f32 1.0, %v319_v36  ;;  %vm340_vm12 = vmor %vm338_vm10, %vm339_vm7  ;;  %vm543_vm7 = vcmask 785408   ;;  %vm529_vm10 = vcmask 900096  }
  0xb3   : > { %v335_v40 = vsub.f32 1.0, %v334_v37 }
  0xb4   : > { %v321_v41 = vmul.f32 %v1487_v34, %v320_v38 }
  0xb5   : > { %v336_v44 = vmul.f32 %v1489_v35, %v335_v40 }
  0xb6   : > { %v322_v46 = vadd.f32 %v1487_v34, %v321_v41 }
  0xb7   : > { %v337_v48 = vadd.f32 %v1489_v35, %v336_v44  ;;  %v261_v44 = vld [vmem:[%s1976_s2 + $0x8] sm:$0xff] }
  0xb8   : > { %v326_v49 = vsel %vm325_vm9, %v1487_v34, %v322_v46  ;;  %vm515_vm9 = vcmask 908288  }
  0xb9   : > { %v331_v51 = vsel %vm328_vm11, %v330_v47, %v326_v49  ;;  %v341_v52 = vsel %vm340_vm12, %v1489_v35, %v337_v48  ;;  %vm490_vm11 = vcmask 1031168   ;;  %vm504_vm12 = vcmask 916480  }
  0xba   : > { %v348_v53 = vmul.f32 %v331_v51, %v294_v14  ;;  %v346_v54 = vsel %vm343_vm13, %v345_v50, %v341_v52  ;;  %vm476_vm13 = vcmask 1039360  }
  0xbb   : > { %v349_v55 = vmul.f32 %v346_v54, %v307_v15 }
  0xbc   : > { %352 = vrot.lane.b32.xlu0 %v348_v53, %s1574_s20 }
  0xbd   : > { %354 = vrot.lane.b32.xlu1 %v349_v55, %s1574_s20  ;;  %s1219_s20 = sshll.u32 %s242_s18, 5 }
  0xc4   : > { %1431 = vrot.lane.b32.xlu0 %v1425_v33, %s1575_s26 }
  0xc5   : > { %1416 = vrot.lane.b32.xlu1 %v1425_v33, %s1576_s28  ;;  %s244_s28 = scalar_lea.vmem [#allocation2], %s1219_s20 }
  0xcd   : > { %1436 = vrot.lane.b32.xlu1 %v1420_v29, %s1577_s29 }
 0x12e   : > { %v353_v59 = vpop.permute.xlu0 %352 }
 0x12f   : > { %v355_v60 = vpop.permute.xlu1 %354  ;;  %v1716_v61 = vsel %vm356_vm14, 0.0, %v353_v59 }
 0x130   : > { %v1719_v63 = vsel %vm356_vm14, %v355_v60, 0.0  ;;  %v1721_v0 = vsel %vm356_vm14, %v353_v59, %v355_v60  ;;  %v453_v5 = vmul.f32 %v1423_v58, %v1716_v61  ;;  %v441_v19 = vmul.f32 %v1428_v8, %v1716_v61 }
 0x131   : > { %552 = vrot.lane.b32.xlu1 %v1719_v63, %s1578_s9  ;;  %v1445_v4 = vpack.i.bf16 %v1721_v0, %v1716_v61  ;;  %v454_v6 = vmul.f32 %v449_v62, %v1721_v0  ;;  %v442_v20 = vmul.f32 %v437_v11, %v1721_v0  ;;  %v455_v31 = vmul.f32 %v1424_v57, %v1719_v63 }
 0x132   : > { %v443_v38 = vmul.f32 %v1429_v7, %v1719_v63  ;;  %vm588_vm14 = vcmask 588800  }
 0x133   : > { %1446 = vrot.lane.b32.xlu2 %v1445_v4, %s1579_s10  ;;  %1441 = vrot.lane.b32.xlu0 %v1445_v4, %s1578_s9  ;;  %v1455_v10 = vpack.i.bf16 %v454_v6, %v453_v5  ;;  %v1460_v27 = vpack.i.bf16 %v442_v20, %v441_v19  ;;  %s1350_s9 = sshll.u32 %s1649_s25, 5 }
 0x136   : > { %v1432_v17 = vpop.permute.xlu0 %1431 }
 0x137   : > { %v1417_v9 = vpop.permute.xlu1 %1416  ;;  %v1434_v22 = vunpack.i.h.bf16 %v1432_v17  ;;  %v1433_v23 = vunpack.i.l.bf16 %v1432_v17 }
 0x138   : > { %v1419_v12 = vunpack.i.h.bf16 %v1417_v9  ;;  %v1418_v14 = vunpack.i.l.bf16 %v1417_v9 }
 0x139   : > { %1456 = vrot.lane.b32.xlu1 %v1455_v10, %s1580_s11  ;;  %v411_v29 = vsel %vm410_vm4, %v1433_v23, %v1434_v22  ;;  %v415_v30 = vmul.f32 %v1433_v23, %v1716_v61  ;;  %v417_v33 = vmul.f32 %v1434_v22, %v1719_v63 }
 0x13a   : > { %v461_v15 = vsel %vm460_vm3, %v1418_v14, %v1419_v12  ;;  %v465_v16 = vmul.f32 %v1418_v14, %v1716_v61  ;;  %v467_v28 = vmul.f32 %v1419_v12, %v1719_v63  ;;  %v416_v32 = vmul.f32 %v411_v29, %v1721_v0 }
 0x13b   : > { %513 = vrot.lane.b32.xlu0 %v1719_v63, %s1579_s10  ;;  %v466_v18 = vmul.f32 %v461_v15, %v1721_v0 }
 0x13c   : > { %v1465_v35 = vpack.i.bf16 %v416_v32, %v415_v30 }
 0x13d   : > { %v1450_v21 = vpack.i.bf16 %v466_v18, %v465_v16 }
 0x13f   : > { %1451 = vrot.lane.b32.xlu2 %v1450_v21, %s1581_s12  ;;  %v1437_v34 = vpop.permute.xlu1 %1436 }
 0x140   : > { %v1439_v36 = vunpack.i.h.bf16 %v1437_v34  ;;  %v1438_v37 = vunpack.i.l.bf16 %v1437_v34 }
 0x141   : > { %1461 = vrot.lane.b32.xlu1 %v1460_v27, %s1582_s13 }
 0x142   : > { %v425_v39 = vsel %vm424_vm5, %v1438_v37, %v1439_v36  ;;  %v431_v40 = vmul.f32 %v1439_v36, %v1719_v63  ;;  %v429_v41 = vmul.f32 %v1438_v37, %v1716_v61 }
 0x143   : > { %566 = vrot.lane.b32.xlu0 %v467_v28, %s1581_s12  ;;  %v430_v42 = vmul.f32 %v425_v39, %v1721_v0 }
 0x145   : > { %v1470_v43 = vpack.i.bf16 %v430_v42, %v429_v41  ;;  %v402_v42 = vmul.f32 %v1704_v25, %v1716_v61  ;;  %v1339_v61 = vld [vmem:[%s1977_s3 + $0x38] sm:$0xff] }
 0x146   : > { %794 = vmatpush.bf16.msrb.mxu0 %v1339_v61 }
 0x147   : > { %541 = vrot.lane.b32.xlu2 %v455_v31, %s1580_s11  ;;  %s1987_s11 = smov 126  }
 0x149   : > { %488 = vrot.lane.b32.xlu1 %v417_v33, %s1982_s14 }
 0x14b   : > { %1466 = vrot.lane.b32.xlu0 %v1465_v35, %s1982_s14  ;;  %s1589_s14 = smov 119  }
 0x14f   : > { %527 = vrot.lane.b32.xlu2 %v443_v38, %s1582_s13 }
 0x151   : > { %1476 = vrot.lane.b32.xlu1 %v1445_v4, %s1981_s15 }
 0x153   : > { %502 = vrot.lane.b32.xlu0 %v431_v40, %s1983_s16 }
 0x157   : > { %1471 = vrot.lane.b32.xlu2 %v1470_v43, %s1983_s16  ;;  %s1590_s16 = smov 118  }
 0x15b   : > { %585 = vperm.xlu0 %1414, %v261_v44  }
 0x15f   : > { %474 = vrot.lane.b32.xlu2 %v1719_v63, %s1981_s15  ;;  %s1586_s15 = smov 8  }
 0x163   : > { %825 = vperm.xlu0 %1414, %v262_v45  }
 0x18d   : > { %v1447_v46 = vpop.permute.xlu2 %1446 }
 0x18e   : > { %v1449_v6 = vunpack.i.h.bf16 %v1447_v46  ;;  %v1448_v7 = vunpack.i.l.bf16 %v1447_v46 }
 0x190   : > { %v516_v14 = vsel %vm515_vm9, %v1448_v7, %v1449_v6 }
 0x199   : > { %v1452_v47 = vpop.permute.xlu2 %1451 }
 0x19a   : > { %v1454_v48 = vunpack.i.h.bf16 %v1452_v47  ;;  %v1453_v49 = vunpack.i.l.bf16 %v1452_v47 }
 0x19c   : > { %v569_v50 = vsel %vm568_vm6, %v1453_v49, %v1454_v48 }
 0x19d   : > { %v581_v51 = vpack.c.bf16 %v569_v50, %v569_v50  ;;  %v255_v50 = vld [vmem:[%s1975_s1 + $0x4] sm:$0xf] }
 0x19f   : > { %v593_v52 = vsel %vm277_vm0, %v581_v51, 0  ;;  %v403_v51 = vmul.f32 %v1707_v26, %v1721_v0  ;;  %v1337_v26 = vld [vmem:[%s1977_s3 + $0x28] sm:$0xff]  ;;  %v1346_v0 = vld [vmem:[%s1977_s3 + $0x70] sm:$0xff] }
 0x1a0   : > { %601 = vmatpush.bf16.msra.mxu2 %v593_v52  ;;  %v1338_v52 = vld [vmem:[%s1977_s3 + $0x30] sm:$0xff] }
 0x1a1   : > { %v542_v54 = vpop.permute.xlu2 %541  ;;  %795 = vmatpush.bf16.msrb.mxu0 %v1338_v52 }
 0x1a3   : > { %v553_v53 = vpop.permute.xlu1 %552 }
 0x1a5   : > { %v1442_v55 = vpop.permute.xlu0 %1441  ;;  %796 = vmatpush.bf16.msrb.mxu0 %v1337_v26  ;;  %v1331_v26 = vld [vmem:[%s1975_s1 + $0x10] sm:$0xff] }
 0x1a6   : > { %v1444_v56 = vunpack.i.h.bf16 %v1442_v55  ;;  %v1443_v57 = vunpack.i.l.bf16 %v1442_v55  ;;  %v1345_v55 = vld [vmem:[%s1977_s3 + $0x68] sm:$0xff] }
 0x1a8   : > { %v555_v1 = vsel %vm554_vm8, %v1443_v57, %v1444_v56  ;;  %v556_v22 = vsel %vm554_vm8, %v1444_v56, %v553_v53  ;;  %v1347_v53 = vld [vmem:[%s1977_s3 + $0x78] sm:$0xff]  ;;  %v1344_v57 = vld [vmem:[%s1977_s3 + $0x60] sm:$0xff] }
 0x1a9   : > { %v528_v4 = vpop.permute.xlu2 %527  ;;  %808 = vmatpush.bf16.msrb.mxu1 %v1347_v53  ;;  %v1335_v56 = vld [vmem:[%s1977_s3 + $0x18] sm:$0xff]  ;;  %v1330_v53 = vld [vmem:[%s1975_s1 + $0x8] sm:$0xff] }
 0x1ab   : > { %v1457_v58 = vpop.permute.xlu1 %1456 }
 0x1ac   : > { %v1459_v59 = vunpack.i.h.bf16 %v1457_v58  ;;  %v1458_v60 = vunpack.i.l.bf16 %v1457_v58  ;;  %v1334_v58 = vld [vmem:[%s1977_s3 + $0x10] sm:$0xff] }
 0x1ad   : > { %v514_v62 = vpop.permute.xlu0 %513  ;;  %809 = vmatpush.bf16.msrb.mxu1 %v1346_v0 }
 0x1ae   : > { %v544_v63 = vsel %vm543_vm7, %v1458_v60, %v1459_v59  ;;  %v545_v20 = vsel %vm543_vm7, %v1459_v59, %v542_v54  ;;  %v517_v33 = vsel %vm515_vm9, %v1449_v6, %v514_v62  ;;  %v1336_v54 = vld [vmem:[%s1977_s3 + $0x20] sm:$0xff]  ;;  %v1343_v59 = vld [vmem:[%s1977_s3 + $0x58] sm:$0xff]  ;;  %v1333_v60 = vld [vmem:[%s1977_s3 + $0x8] sm:$0xff] }
 0x1af   : > { %v579_v5 = vpack.c.bf16 %v555_v1, %v544_v63  ;;  %v580_v28 = vpack.c.bf16 %v556_v22, %v545_v20  ;;  %797 = vmatpush.bf16.msrb.mxu0 %v1336_v54  ;;  %v1342_v62 = vld [vmem:[%s1977_s3 + $0x50] sm:$0xff] }
 0x1b1   : > { %602 = vmatpush.bf16.msra.mxu2 %v579_v5  ;;  %v1472_v18 = vpop.permute.xlu2 %1471  ;;  %810 = vmatpush.bf16.msrb.mxu1 %v1345_v55  ;;  %v1341_v5 = vld [vmem:[%s1977_s3 + $0x48] sm:$0xff] }
 0x1b2   : > { %v1474_v23 = vunpack.i.h.bf16 %v1472_v18  ;;  %v1473_v27 = vunpack.i.l.bf16 %v1472_v18 }
 0x1b3   : > { %v1462_v8 = vpop.permute.xlu1 %1461  ;;  %798 = vmatpush.bf16.msrb.mxu0 %v1335_v56 }
 0x1b4   : > { %v1464_v9 = vunpack.i.h.bf16 %v1462_v8  ;;  %v1463_v10 = vunpack.i.l.bf16 %v1462_v8  ;;  %v505_v36 = vsel %vm504_vm12, %v1473_v27, %v1474_v23  ;;  %v1340_v8 = vld [vmem:[%s1977_s3 + $0x40] sm:$0xff] }
 0x1b5   : > { %v567_v11 = vpop.permute.xlu0 %566  ;;  %811 = vmatpush.bf16.msrb.mxu1 %v1344_v57 }
 0x1b6   : > { %v570_v12 = vsel %vm568_vm6, %v1454_v48, %v567_v11  ;;  %v530_v15 = vsel %vm529_vm10, %v1463_v10, %v1464_v9  ;;  %v531_v30 = vsel %vm529_vm10, %v1464_v9, %v528_v4  ;;  %v1332_v4 = vld [vmem:[%s1977_s3] sm:$0xff] }
 0x1b7   : > { %v577_v16 = vpack.c.bf16 %v530_v15, %v516_v14  ;;  %v582_v17 = vpack.c.bf16 %v570_v12, %v570_v12  ;;  %v578_v34 = vpack.c.bf16 %v531_v30, %v517_v33  ;;  %799 = vmatpush.bf16.msrb.mxu0 %v1334_v58 }
 0x1b9   : > { %603 = vmatpush.bf16.msra.mxu2 %v577_v16  ;;  %v596_v19 = vsel %vm277_vm0, %v582_v17, 0  ;;  %v475_v46 = vpop.permute.xlu2 %474  ;;  %812 = vmatpush.bf16.msrb.mxu1 %v1343_v59 }
 0x1ba   : > { %614 = vmatpush.bf16.msra.mxu3 %v596_v19 }
 0x1bb   : > { %v489_v21 = vpop.permute.xlu1 %488  ;;  %800 = vmatpush.bf16.msrb.mxu0 %v1333_v60 }
 0x1bd   : > { %v1467_v29 = vpop.permute.xlu0 %1466  ;;  %813 = vmatpush.bf16.msrb.mxu1 %v1342_v62 }
 0x1be   : > { %v1469_v31 = vunpack.i.h.bf16 %v1467_v29  ;;  %v1468_v32 = vunpack.i.l.bf16 %v1467_v29  ;;  %615 = vmatpush.bf16.msra.mxu3 %v580_v28 }
 0x1bf   : > { %801 = vmatpush.bf16.msrb.mxu0 %v1332_v4 }
 0x1c0   : > { %v491_v35 = vsel %vm490_vm11, %v1468_v32, %v1469_v31  ;;  %v492_v45 = vsel %vm490_vm11, %v1469_v31, %v489_v21 }
 0x1c1   : > { %v575_v37 = vpack.c.bf16 %v505_v36, %v491_v35  ;;  %814 = vmatpush.bf16.msrb.mxu1 %v1341_v5 }
 0x1c2   : > { %616 = vmatpush.bf16.msra.mxu3 %v578_v34 }
 0x1c3   : > { %v1477_v38 = vpop.permute.xlu1 %1476  ;;  %604 = vmatpush.bf16.msra.mxu2 %v575_v37 }
 0x1c4   : > { %v1479_v39 = vunpack.i.h.bf16 %v1477_v38  ;;  %v1478_v40 = vunpack.i.l.bf16 %v1477_v38 }
 0x1c5   : > { %v503_v41 = vpop.permute.xlu0 %502  ;;  %815 = vmatpush.bf16.msrb.mxu1 %v1340_v8 }
 0x1c6   : > { %v506_v43 = vsel %vm504_vm12, %v1474_v23, %v503_v41  ;;  %v477_v44 = vsel %vm476_vm13, %v1478_v40, %v1479_v39  ;;  %v478_v49 = vsel %vm476_vm13, %v1479_v39, %v475_v46 }
 0x1c7   : > { %v573_v47 = vpack.c.bf16 %v477_v44, %v402_v42  ;;  %v576_v48 = vpack.c.bf16 %v506_v43, %v492_v45  ;;  %v574_v25 = vpack.c.bf16 %v478_v49, %v403_v51  ;;  %v265_v49 = vld [vmem:[%s1976_s2 + $0x28] sm:$0xff] }
 0x1c8   : > { %840 = vperm.xlu2 %1481, %v265_v49   ;;  %v892_v49 = vld [vmem:[%s1979_s5 + $0x20] sm:$0xff] }
 0x1c9   : > { %605 = vmatpush.bf16.msra.mxu2 %v573_v47  ;;  %617 = vmatpush.bf16.msra.mxu3 %v576_v48  ;;  %v264_v48 = vld [vmem:[%s1976_s2 + $0x20] sm:$0xff] }
 0x1ca   : > { %835 = vperm.xlu1 %1480, %v264_v48  }
 0x1cc   : > { %1230 = vmatmul.msk.bf16.vlgmr.msra.gmra.mxu2 %vm588_vm14, %v255_v50 }
 0x1cd   : > { %618 = vmatpush.bf16.msra.mxu3 %v574_v25  ;;  %v586_v63 = vpop.permute.xlu0 %585 }
 0x1d0   : > { %1231 = vmatmul.msk.bf16.vlgmr.msra.gmra.mxu3 %vm588_vm14, %v255_v50 }
 0x222   : > { %v841_v59 = vpop.permute.xlu2 %840 }
 0x23c   : > { %v836_v55 = vpop.permute.xlu1 %835 }
 0x24f   : > { %v607_v1 = vpop.f32.mrf.mxu2 }
 0x250   : > { %v608_v6 = vadd.f32 %v607_v1, %v586_v63  ;;  %v826_v1 = vpop.permute.xlu0 %825 }
 0x252   : > { %v1232_v7 = vmul.f32 -1.442695, %v608_v6 }
 0x253   : > { %v620_v9 = vpop.f32.mrf.mxu3 }
 0x254   : > { %1490 = vpow2.f32 %v1232_v7  ;;  %v621_v10 = vadd.f32 %v620_v9, %v586_v63 }
 0x256   : > { %v1233_v11 = vmul.f32 -1.442695, %v621_v10 }
 0x257   : > { %v609_v12 = vpop.f32.mrf.mxu2 }
 0x258   : > { %1492 = vpow2.f32 %v1233_v11  ;;  %v882_v11 = vld [vmem:[%s1978_s4] sm:$0xf]  ;;  %v949_v12 = vand.u32 7, %v1699_v13 }
 0x25a   : > { %v1491_v14 = vpop.eup %1490  ;;  %vm957_vm11 = vcmp.ne.s32.totalorder %v949_v12, 0 }
 0x25b   : > { %v630_v15 = vadd.f32 1.0, %v1491_v14  ;;  %v622_v16 = vpop.f32.mrf.mxu3 }
 0x25d   : > { %1494 = vrcp.f32 %v630_v15  ;;  %v641_v23 = vand.u32 2147483647, %v630_v15  ;;  %v643_v27 = vand.u32 2147483648, %v630_v15  ;;  %vm637_vm3 = vweird.f32 %v630_v15 }
 0x25e   : > { %v1493_v17 = vpop.eup %1492 }
 0x25f   : > { %v631_v18 = vadd.f32 1.0, %v1493_v17  ;;  %vm642_vm6 = vcmp.eq.f32.partialorder %v641_v23, 8.507059e+37  ;;  %v644_v32 = vor.u32 1.1754944e-38, %v643_v27 }
 0x261   : > { %1496 = vrcp.f32 %v631_v18  ;;  %v658_v33 = vand.u32 2147483648, %v631_v18  ;;  %v656_v36 = vand.u32 2147483647, %v631_v18  ;;  %vm652_vm8 = vweird.f32 %v631_v18 }
 0x263   : > { %v1495_v19 = vpop.eup %1494  ;;  %v659_v40 = vor.u32 1.1754944e-38, %v658_v33  ;;  %vm657_vm10 = vcmp.eq.f32.partialorder %v656_v36, 8.507059e+37 }
 0x264   : > { %v633_v20 = vmul.f32 %v1495_v19, %v630_v15  ;;  %vm638_vm2 = vweird.f32 %v1495_v19 }
 0x265   : > { %vm639_vm4 = vmor %vm637_vm3, %vm638_vm2  ;;  %vm941_vm3 = vcmask 72704  }
 0x266   : > { %v634_v21 = vsub.f32 1.0, %v633_v20  ;;  %v1884_v20 = vsel %vm957_vm11, 1.0, %v1571_v24 }
 0x267   : > { %v1497_v22 = vpop.eup %1496 }
 0x268   : > { %v635_v28 = vmul.f32 %v1495_v19, %v634_v21  ;;  %v648_v29 = vmul.f32 %v1497_v22, %v631_v18  ;;  %vm653_vm7 = vweird.f32 %v1497_v22 }
 0x269   : > { %vm654_vm9 = vmor %vm652_vm8, %vm653_vm7 }
 0x26a   : > { %v636_v30 = vadd.f32 %v1495_v19, %v635_v28  ;;  %v649_v31 = vsub.f32 1.0, %v648_v29 }
 0x26c   : > { %v640_v34 = vsel %vm639_vm4, %v1495_v19, %v636_v30  ;;  %v650_v35 = vmul.f32 %v1497_v22, %v649_v31  ;;  %vm943_vm4 = vcmask 596992  }
 0x26d   : > { %v645_v37 = vsel %vm642_vm6, %v644_v32, %v640_v34 }
 0x26e   : > { %v662_v38 = vmul.f32 %v645_v37, %v608_v6  ;;  %v651_v39 = vadd.f32 %v1497_v22, %v650_v35 }
 0x270   : > { %v655_v41 = vsel %vm654_vm9, %v1497_v22, %v651_v39  ;;  %v664_v42 = vpack.c.bf16 %v1684_v2, %v662_v38  ;;  %v263_v2 = vld [vmem:[%s1976_s2 + $0x18] sm:$0xff] }
 0x271   : > { %v660_v43 = vsel %vm657_vm10, %v659_v40, %v655_v41  ;;  %830 = vperm.xlu1 %1480, %v263_v2   ;;  %v890_v2 = vld [vmem:[%s1979_s5 + $0x10] sm:$0xff] }
 0x272   : > { %v663_v44 = vmul.f32 %v660_v43, %v621_v10  ;;  %802 = vmatmul.bf16.vlgmr.msrb.gmra.mxu0 %v664_v42 }
 0x274   : > { %v665_v45 = vpack.c.bf16 %v1686_v3, %v663_v44  ;;  %v888_v3 = vld [vmem:[%s1979_s5] sm:$0xff] }
 0x275   : > { %898 = vperm.xlu2 %1481, %v888_v3   ;;  %v891_v3 = vld [vmem:[%s1979_s5 + $0x18] sm:$0xff] }
 0x276   : > { %816 = vmatmul.bf16.vlgmr.msrb.gmra.mxu1 %v665_v45 }
 0x27d   : > { %978 = vrot.lane.b32.xlu2 %v1884_v20, %s1577_s29  ;;  %s1986_s29 = smov 112  }
 0x285   : > { %970 = vrot.lane.b32.xlu2 %v1884_v20, %s1586_s15 }
 0x2cf   : > { %v899_v15 = vpop.permute.xlu2 %898 }
 0x2d7   : > { %v979_v38 = vpop.permute.xlu2 %978 }
 0x2e3   : > { %v831_v57 = vpop.permute.xlu1 %830 }
 0x2ef   : > { %v803_v46 = vpop.f32.mrf.mxu0 }
 0x2f3   : > { %v817_v47 = vpop.f32.mrf.mxu1 }
 0x2f4   : > { %v818_v25 = vadd.f32 %v817_v47, %v803_v46  ;;  %v971_v46 = vpop.permute.xlu2 %970  ;;  %v889_v47 = vld [vmem:[%s1979_s5 + $0x8] sm:$0xff] }
 0x2f7   : > { %v805_v50 = vpop.f32.mrf.mxu0 }
 0x2fb   : > { %v819_v51 = vpop.f32.mrf.mxu1 }
 0x2fc   : > { %v820_v61 = vadd.f32 %v819_v51, %v805_v50  ;;  %v893_v50 = vld [vmem:[%s1979_s5 + $0x28] sm:$0xff] }
 0x2fe   : > { %v822_v52 = vpack.c.bf16 %v820_v61, %v818_v25 }
 0x300   : > { %866 = vmatpush.bf16.msrb.mxu2 %v822_v52 }
 0x303   : > { %1306 = vmatmul.msk.bf16.vlgmr.msrb.gmra.mxu2 %vm424_vm5, %v1330_v53 }
 0x313   : > { %1307 = vmatmul.msk.bf16.gmra.mxu2 %vm424_vm5, %v1331_v26  ;;  %vm960_vm5 = vcmp.ne.s32.totalorder %v949_v12, 7 }
 0x314   : > { %v1311_v14 = vsel %vm960_vm5, 1.0, %v1571_v24 }
 0x315   : > { %982 = vrot.lane.b32.xlu1 %v1311_v14, %s1573_s19  ;;  %s1587_s19 = smov 9  }
 0x31d   : > { %965 = vrot.lane.b32.xlu1 %v1311_v14, %s1575_s26  ;;  %s1588_s26 = smov 10  }
 0x386   : > { %v868_v0 = vpop.f32.mrf.mxu2 }
 0x387   : > { %v1861_v4 = vadd.f32 %v868_v0, %v826_v1  ;;  %v983_v35 = vpop.permute.xlu1 %982 }
 0x389   : > { %v878_v9 = vmax.f32 %v1861_v4, 0.0 }
 0x38e   : > { %v870_v54 = vpop.f32.mrf.mxu2 }
 0x38f   : > { %v1857_v62 = vadd.f32 %v870_v54, %v831_v57  ;;  %v966_v42 = vpop.permute.xlu1 %965 }
 0x391   : > { %v879_v7 = vmax.f32 %v1857_v62, 0.0 }
 0x393   : > { %v894_v10 = vpack.c.bf16 %v879_v7, %v878_v9 }
 0x396   : > { %v873_v56 = vpop.f32.mrf.mxu2 }
 0x397   : > { %v1855_v58 = vadd.f32 %v873_v56, %v836_v55 }
 0x399   : > { %v880_v5 = vmax.f32 %v1855_v58, 0.0 }
 0x39e   : > { %v875_v60 = vpop.f32.mrf.mxu2 }
 0x39f   : > { %v1859_v63 = vadd.f32 %v875_v60, %v841_v59 }
 0x3a1   : > { %v881_v6 = vmax.f32 %v1859_v63, 0.0 }
 0x3a3   : > { %v895_v8 = vpack.c.bf16 %v881_v6, %v880_v5 }
 0x3a5   : > { %910 = vmatpush.bf16.msrb.mxu3 %v895_v8 }
 0x3a9   : > { %911 = vmatpush.bf16.msrb.mxu3 %v894_v10  ;;  %v883_v10 = vld [vmem:[%s1978_s4 + $0x4] sm:$0xf] }
 0x3ac   : > { %1308 = vmatmul.msk.bf16.vlgmr.msrb.gmra.mxu3 %vm448_vm15, %v882_v11 }
 0x42f   : > { %v913_v16 = vpop.f32.mrf.mxu3 }
 0x430   : > { %v914_v17 = vadd.f32 %v913_v16, %v899_v15 }
 0x432   : > { %v1309_v18 = vmul.f32 -1.442695, %v914_v17 }
 0x434   : > { %1498 = vpow2.f32 %v1309_v18 }
 0x437   : > { %v915_v19 = vpop.f32.mrf.mxu3 }
 0x43a   : > { %v1499_v21 = vpop.eup %1498 }
 0x43b   : > { %v920_v13 = vadd.f32 1.0, %v1499_v21 }
 0x43d   : > { %1500 = vrcp.f32 %v920_v13  ;;  %v932_v28 = vand.u32 2147483648, %v920_v13  ;;  %v930_v30 = vand.u32 2147483647, %v920_v13  ;;  %vm926_vm12 = vweird.f32 %v920_v13 }
 0x43f   : > { %v933_v24 = vor.u32 1.1754944e-38, %v932_v28  ;;  %vm931_vm2 = vcmp.eq.f32.partialorder %v930_v30, 8.507059e+37 }
 0x443   : > { %v1501_v22 = vpop.eup %1500 }
 0x444   : > { %v922_v23 = vmul.f32 %v1501_v22, %v920_v13  ;;  %vm927_vm15 = vweird.f32 %v1501_v22 }
 0x445   : > { %vm928_vm13 = vmor %vm926_vm12, %vm927_vm15 }
 0x446   : > { %v923_v27 = vsub.f32 1.0, %v922_v23 }
 0x448   : > { %v924_v29 = vmul.f32 %v1501_v22, %v923_v27 }
 0x44a   : > { %v925_v31 = vadd.f32 %v1501_v22, %v924_v29 }
 0x44c   : > { %v929_v32 = vsel %vm928_vm13, %v1501_v22, %v925_v31 }
 0x44d   : > { %v934_v33 = vsel %vm931_vm2, %v933_v24, %v929_v32 }
 0x44e   : > { %v936_v34 = vmul.f32 %v934_v33, %v914_v17  ;;  %v1348_v33 = vld [vmem:[%s1978_s4 + $0x8] sm:$0xff] }
 0x450   : > { %938 = vrot.lane.b32.xlu0 %v936_v34, %s1587_s19  ;;  %v1349_v34 = vld [vmem:[%s1978_s4 + $0x10] sm:$0xff] }
 0x458   : > { %974 = vrot.lane.b32.xlu0 %v1311_v14, %s1588_s26 }
 0x4c2   : > { %v939_v36 = vpop.permute.xlu0 %938 }
 0x4c3   : > { %v942_v37 = vsel %vm941_vm3, 0.0, %v939_v36 }
 0x4c4   : > { %v944_v39 = vsel %vm943_vm4, %v942_v37, 0.0 }
 0x4c5   : > { %1009 = vrot.lane.b32.xlu2 %v944_v39, %s1579_s10  ;;  %v985_v40 = vmul.f32 %v983_v35, %v944_v39  ;;  %v981_v41 = vmul.f32 %v979_v38, %v944_v39  ;;  %v968_v44 = vmul.f32 %v966_v42, %v944_v39  ;;  %v973_v48 = vmul.f32 %v971_v46, %v944_v39  ;;  %s1591_s10 = smov 120  }
 0x4c6   : > { %v963_v1 = vmul.f32 %v1884_v20, %v944_v39 }
 0x4c7   : > { %1013 = vrot.lane.b32.xlu0 %v985_v40, %s1582_s13  ;;  %1006 = vrot.lane.b32.xlu1 %v981_v41, %s1986_s29  ;;  %s1988_s13 = smov 127   ;;  %s1149_s29 = scalar_lea.hbm %s1980_s6, %s1350_s9 }
 0x4c8   : > { %s1152_s25 = sshll.u32 %s1149_s29, 4  ;;  %s1153_s25 = int_to_ptr.hbm [resolvable:$true] %s1152_s25 }
 0x4ca   : > { %v975_v43 = vpop.permute.xlu0 %974 }
 0x4cb   : > { %v977_v45 = vmul.f32 %v975_v43, %v944_v39 }
 0x4cd   : > { %991 = vrot.lane.b32.xlu2 %v968_v44, %s1987_s11  ;;  %s1150_s11 = sshll.u32 %s244_s28, 4  ;;  %s1151_s11 = int_to_ptr.vmem [resolvable:$true] %s1150_s11 }
 0x4cf   : > { %998 = vrot.lane.b32.xlu0 %v944_v39, %s1589_s14  ;;  %1002 = vrot.lane.b32.xlu1 %v977_v45, %s1590_s16  ;;  %s1138_s14 = scalar_lea.sflag [#allocation3], %s242_s18  ;;  %s1520_s16 = sshra.s32 %s1153_s25, 4  ;;  %s1521_s16 = int_to_ptr.hbm [resolvable:$true] %s1520_s16 }
 0x4d0   : > { %s1522_s12 = scalar_lea.hbm %s1521_s16, 32  ;;  %p1527_p0 = scmp.lt.s32.totalorder %s1521_s16, %s1980_s6 }
 0x4d1   : > { %p1523_p11 = scmp.ne.s32.totalorder %s1521_s16, %s1522_s12 }
 0x4d3   : > { %p1524_p12 = pnand %p1523_p11, %p1666_p5 }
 0x4d5   : > { %1023 = vperm.xlu2 %1481, %v889_v47   ;;  %p1525_p13 = pneg %p1524_p12 }
 0x4d7   : > { %995 = vrot.lane.b32.xlu0 %v973_v48, %s1591_s10  ;;  %987 = vrot.lane.b32.xlu1 %v944_v39, %s1988_s13  ;;  %s1526_s13 = scalar_lea.hbm %s1980_s6, 64 }
 0x4d8   : > { %p1528_p1 = scmp.lt.s32.totalorder %s1526_s13, %s1522_s12 }
 0x4da   : > { %p1529_p2 = por %p1528_p1, %p1527_p0 }
 0x4dc   : > { %p1530_p3 = pnand %p1529_p2, %p1525_p13 }
 0x4dd   : > { %1078 = vperm.xlu2 %1481, %v892_v49  }
 0x4df   : > { %1068 = vperm.xlu0 %1414, %v890_v2   ;;  %1073 = vperm.xlu1 %1480, %v891_v3  }
 0x4e7   : > { %1083 = vperm.xlu0 %1414, %v893_v50  }
 0x51f   : > { %v1010_v53 = vpop.permute.xlu2 %1009 }
 0x527   : > { %v992_v56 = vpop.permute.xlu2 %991 }
 0x52f   : > { %v1024_v11 = vpop.permute.xlu2 %1023 }
 0x537   : > { %v1079_v40 = vpop.permute.xlu2 %1078 }
 0x539   : > { %v1007_v51 = vpop.permute.xlu1 %1006  ;;  %v1014_v25 = vpop.permute.xlu0 %1013 }
 0x53a   : > { %v1020_v61 = vpack.c.bf16 %v1014_v25, %v1014_v25  ;;  %v1019_v26 = vpack.c.bf16 %v1010_v53, %v1007_v51 }
 0x53c   : > { %v1030_v52 = vsel %vm277_vm0, %v1020_v61, 0 }
 0x53d   : > { %1035 = vmatpush.bf16.msra.mxu0 %v1030_v52 }
 0x541   : > { %v1003_v0 = vpop.permute.xlu1 %1002  ;;  %1036 = vmatpush.bf16.msra.mxu0 %v1019_v26  ;;  %v999_v54 = vpop.permute.xlu0 %998 }
 0x542   : > { %v1018_v55 = vpack.c.bf16 %v1003_v0, %v999_v54 }
 0x545   : > { %1037 = vmatpush.bf16.msra.mxu0 %v1018_v55 }
 0x549   : > { %v996_v57 = vpop.permute.xlu0 %995  ;;  %v988_v60 = vpop.permute.xlu1 %987 }
 0x54a   : > { %v1017_v59 = vpack.c.bf16 %v996_v57, %v992_v56  ;;  %v1016_v8 = vpack.c.bf16 %v988_v60, %v963_v1 }
 0x54c   : > { %1038 = vmatpush.bf16.msra.mxu0 %v1017_v59 }
 0x550   : > { %1039 = vmatpush.bf16.msra.mxu0 %v1016_v8 }
 0x551   : > { %v1069_v35 = vpop.permute.xlu0 %1068  ;;  %v1074_v43 = vpop.permute.xlu1 %1073 }
 0x553   : > { %1312 = vmatmul.msk.bf16.vlgmr.msra.gmra.mxu0 %vm588_vm14, %v883_v10 }
 0x559   : > { %v1084_v48 = vpop.permute.xlu0 %1083 }
 0x5d0   : > { %v1041_v12 = vpop.f32.mrf.mxu0 }
 0x5d1   : > { %v1042_v14 = vadd.f32 %v1041_v12, %v1024_v11 }
 0x5d3   : > { %v1313_v15 = vmul.f32 -1.442695, %v1042_v14 }
 0x5d5   : > { %1502 = vpow2.f32 %v1313_v15 }
 0x5d8   : > { %v1043_v16 = vpop.f32.mrf.mxu0 }
 0x5db   : > { %v1503_v17 = vpop.eup %1502 }
 0x5dc   : > { %v1048_v18 = vadd.f32 1.0, %v1503_v17 }
 0x5de   : > { %1504 = vrcp.f32 %v1048_v18  ;;  %v1060_v13 = vand.u32 2147483648, %v1048_v18  ;;  %v1058_v23 = vand.u32 2147483647, %v1048_v18  ;;  %vm1054_vm7 = vweird.f32 %v1048_v18 }
 0x5e0   : > { %v1061_v28 = vor.u32 1.1754944e-38, %v1060_v13  ;;  %vm1059_vm8 = vcmp.eq.f32.partialorder %v1058_v23, 8.507059e+37 }
 0x5e4   : > { %v1505_v19 = vpop.eup %1504 }
 0x5e5   : > { %v1050_v20 = vmul.f32 %v1505_v19, %v1048_v18  ;;  %vm1055_vm6 = vweird.f32 %v1505_v19 }
 0x5e6   : > { %vm1056_vm14 = vmor %vm1054_vm7, %vm1055_vm6 }
 0x5e7   : > { %v1051_v21 = vsub.f32 1.0, %v1050_v20 }
 0x5e9   : > { %v1052_v22 = vmul.f32 %v1505_v19, %v1051_v21 }
 0x5eb   : > { %v1053_v27 = vadd.f32 %v1505_v19, %v1052_v22 }
 0x5ed   : > { %v1057_v29 = vsel %vm1056_vm14, %v1505_v19, %v1053_v27 }
 0x5ee   : > { %v1062_v30 = vsel %vm1059_vm8, %v1061_v28, %v1057_v29 }
 0x5ef   : > { %v1064_v31 = vmul.f32 %v1062_v30, %v1042_v14 }
 0x5f1   : > { %v1065_v24 = vpack.c.bf16 %v1064_v31, %v1064_v31 }
 0x5f3   : > { %v1103_v32 = vsel %vm277_vm0, %v1065_v24, 0  ;;  %vm1132_vm0 = vcmask 523264  }
 0x5f4   : > { %1112 = vmatpush.bf16.msra.mxu1 %v1103_v32  ;;  %1351 = vmatpush.bf16.msra.mxu3 %v1103_v32 }
 0x5f7   : > { %1322 = vmatmul.msk.bf16.vlgmr.msra.gmra.mxu1 %vm273_vm1, %v1348_v33  ;;  %1323 = vmatmul.msk.bf16.vlgmr.msra.gmra.mxu3 %vm273_vm1, %v1349_v34 }
 0x674   : > { %v1114_v36 = vpop.f32.mrf.mxu1 }
 0x675   : > { %v1115_v37 = vadd.f32 %v1114_v36, %v1069_v35 }
 0x677   : > { %v1124_v38 = vadd.f32 %v1115_v37, %v878_v9 }
 0x679   : > { %v1128_v39 = vmax.f32 %v1124_v38, 0.0 }
 0x67a   : > { %v1119_v41 = vpop.f32.mrf.mxu3 }
 0x67b   : > { %1133 = vst.msk [vmem:[%s244_s28] sm:$0xff] %vm1132_vm0, %v1128_v39  ;;  %v1120_v42 = vadd.f32 %v1119_v41, %v1079_v40 }
 0x67c   : > { %v1116_v44 = vpop.f32.mrf.mxu1 }
 0x67d   : > { %v1126_v45 = vadd.f32 %v1120_v42, %v880_v5  ;;  %v1117_v46 = vadd.f32 %v1116_v44, %v1074_v43 }
 0x67f   : > { %v1130_v47 = vmax.f32 %v1126_v45, 0.0  ;;  %v1125_v4 = vadd.f32 %v1117_v46, %v879_v7 }
 0x681   : > { %1135 = vst.msk [vmem:[%s244_s28 + $0x10] sm:$0xff] %vm1132_vm0, %v1130_v47  ;;  %v1129_v9 = vmax.f32 %v1125_v4, 0.0 }
 0x682   : > { %v1121_v49 = vpop.f32.mrf.mxu3 }
 0x683   : > { %1134 = vst.msk [vmem:[%s244_s28 + $0x8] sm:$0xff] %vm1132_vm0, %v1129_v9  ;;  %v1122_v58 = vadd.f32 %v1121_v49, %v1084_v48 }
 0x685   : > { %v1127_v62 = vadd.f32 %v1122_v58, %v881_v6 }
 0x687   : > { %v1131_v5 = vmax.f32 %v1127_v62, 0.0 }
 0x689   : > { %1136 = vst.msk [vmem:[%s244_s28 + $0x18] sm:$0xff] %vm1132_vm0, %v1131_v5 }
 0x68a   : > { %1533 = shalt.err (!%p1530_p3)
}
 0x68b   : > { %s1592_s18 = smov 128  }
 0x68c   : > { %1352 = dma.vmem_to_hbm [thread:$0]  (%p1666_p5), %s1151_s11, 512, %s1153_s25, %s1138_s14, %s1592_s18, %s1592_s18, %s1586_s15  }
 0x68d PF: > { %p1358_p4 = scmp.ge.s32.totalorder %s1568_s24, 2  ;;  %s1167_s28 = sand.u32 1, %s1556_s21  }
 0x68e   : > { %s1168_s19 = scalar_lea.sflag [#allocation3], %s1167_s28 }
 0x68f   : > { %p1355_p7 = pnand %p1358_p4, %p1670_p6 }
 0x691   : > { %p1356_p8 = pneg %p1355_p7 }
 0x693   : > { %1551 = dma.done.wait (%p1356_p8), %s1168_s19, 512  }
 0x694   : > { %1553 = vsyncadd (%p1356_p8), %s1168_s19, 4294966784  ;;  %p16_p9 = scmp.ge.s32.totalorder %s1653_s27, 4   ;;  %s1989_s21 = smov %s1560_s22 }
 0x695   : > { %s1990_s22 = smov %s1564_s23  ;;  %s1991_s23 = smov %s1664_s30 }
 0x696   : > { %s1992_s24 = smov %s1653_s27  ;;  %18 = sbr.rel (!%p16_p9) target bundleno = 3 (0x3), region = 79 }
 0x69b   :  { %1174 = vsyncpa [#allocation3], 1 }
 0x69c   :  { %1176 = vsyncpa [#allocation3 + $0x1], 1 }

</bundles_post_ra>
